<compile_context>
chip_gen: v6e
topology: v6e:2x2x1
jax: 0.10.0
libtpu: 0.0.40
codegen_flags: <defaults>
</compile_context>

<pallas_src>
import jax
import jax.numpy as jnp
from jax.experimental import pallas as pl
from jax.experimental.pallas import tpu as pltpu

EPS = 1e-5


# ------------------------------- kernels ----------------------------------
def pool_conv1_kernel(x_ref, w_ref, y_ref, st_ref, pad_ref):
    """MaxPool(2,2) + conv1 (pre-BN) + per-block BN statistics.

    x_ref:   (B, H, W*Cin)           f32  lane-dense NHWC rows
    w_ref:   (3, (W-1)*Cin, Wo*Mid)  bf16 banded per-dy conv matrices
    y_ref:   (B, Ho, Wo*Mid)         bf16 pre-BN conv1 output
    st_ref:  (1, 2, Wo*Mid)          f32  per-block [sum, sum-of-squares]
    pad_ref: (B, Ho+2, (W-1)*Cin)    f32  vertically padded conv input
    """
    B, H, WC = x_ref.shape
    Ho = H // 2
    K = pad_ref.shape[-1]            # (W-1)*Cin
    Nout = w_ref.shape[-1]           # Wo*Mid
    cin = WC - K                     # = Cin

    # 2x2 max pool without leaving the lane-dense layout:
    #   vertical pairs   -> strided sublane slices,
    #   horizontal pairs -> max of the slab with its Cin-lane-shifted copy;
    #     group j of `mm` holds max(col j, col j+1); the banded weights read
    #     only the even groups (the compaction is folded into the weights).
    v = jnp.maximum(x_ref[:, pl.ds(0, Ho, stride=2), :],
                    x_ref[:, pl.ds(1, Ho, stride=2), :])      # (B, Ho, W*Cin)
    mm = jnp.maximum(v[:, :, :K], v[:, :, cin:])              # (B, Ho, (W-1)*Cin)

    # vertically padded conv input; halo rows re-zeroed every step (scratch is
    # per-core and never zero-initialized).
    pad_ref[:, 0:1, :] = jnp.zeros((B, 1, K), pad_ref.dtype)
    pad_ref[:, Ho + 1:Ho + 2, :] = jnp.zeros((B, 1, K), pad_ref.dtype)
    pad_ref[:, 1:Ho + 1, :] = mm

    # 3x3 conv = 3 accumulated (B*Ho, K) x (K, Wo*Mid) matmuls (one per dy).
    acc = jnp.zeros((B * Ho, Nout), jnp.float32)
    for dy in range(3):
        a = pad_ref[:, dy:dy + Ho, :].reshape(B * Ho, K)
        acc = acc + jnp.dot(a.astype(jnp.bfloat16), w_ref[dy],
                            preferred_element_type=jnp.float32)

    # per-block BN statistics (per lane; lane->channel reduce in the wrapper).
    st_ref[:, 0:1, :] = jnp.sum(acc, axis=0, keepdims=True).reshape(1, 1, Nout)
    st_ref[:, 1:2, :] = jnp.sum(acc * acc, axis=0, keepdims=True).reshape(1, 1, Nout)
    y_ref[...] = acc.reshape(B, Ho, Nout).astype(y_ref.dtype)


def bn_relu_conv2_kernel(y1_ref, sc_ref, sh_ref, w_ref, y2_ref, st_ref, pad_ref):
    """BN1(apply, folded) + ReLU + conv2 (pre-BN) + per-block BN2 statistics.

    y1_ref:  (B, Ho, Wo*Mid)        bf16
    sc_ref:  (1, Wo*Mid)            f32  folded BN1 scale (tiled over Wo)
    sh_ref:  (1, Wo*Mid)            f32  folded BN1 shift (tiled over Wo)
    w_ref:   (3, Wo*Mid, Wo*Cout)   bf16 banded per-dy conv matrices
    y2_ref:  (B, Ho, Wo*Cout)       f32  pre-BN conv2 output
    st_ref:  (1, 2, Wo*Cout)        f32
    pad_ref: (B, Ho+2, Wo*Mid)      f32
    """
    B, Ho, K = y1_ref.shape
    Nout = w_ref.shape[-1]

    # folded BN1 + ReLU as a single FMA on the lane-dense tile (no reshapes).
    h = jnp.maximum(y1_ref[...].astype(jnp.float32) * sc_ref[...] + sh_ref[...],
                    0.0)

    pad_ref[:, 0:1, :] = jnp.zeros((B, 1, K), pad_ref.dtype)
    pad_ref[:, Ho + 1:Ho + 2, :] = jnp.zeros((B, 1, K), pad_ref.dtype)
    pad_ref[:, 1:Ho + 1, :] = h

    acc = jnp.zeros((B * Ho, Nout), jnp.float32)
    for dy in range(3):
        a = pad_ref[:, dy:dy + Ho, :].reshape(B * Ho, K)
        acc = acc + jnp.dot(a.astype(jnp.bfloat16), w_ref[dy],
                            preferred_element_type=jnp.float32)

    st_ref[:, 0:1, :] = jnp.sum(acc, axis=0, keepdims=True).reshape(1, 1, Nout)
    st_ref[:, 1:2, :] = jnp.sum(acc * acc, axis=0, keepdims=True).reshape(1, 1, Nout)
    y2_ref[...] = acc.reshape(B, Ho, Nout).astype(y2_ref.dtype)


# ------------------------------ wrapper ------------------------------------
def _banded_tap_matrices(w_hwio, Wo, group_stride, in_groups):
    """Fold the 3 horizontal taps of a 3x3 'same' conv (and, via group_stride,
    the stage-1 even-group pooling compaction) into one lane-dense matrix per
    vertical tap dy.

    w_hwio: (3, 3, C, Co).  Returns (3, in_groups*C, Wo*Co) where the row
    block g*C..g*C+C of matrix dy carries w[dy, dx] for every output pixel x
    with (x+dx-1)*group_stride == g (out-of-range taps stay zero = padding).
    """
    _, _, C, Co = w_hwio.shape
    x = jnp.arange(Wo)
    mats = []
    for dy in range(3):
        T = jnp.zeros((in_groups, C, Wo, Co), jnp.float32)
        for dx in range(3):
            xin = x + dx - 1
            valid = (xin >= 0) & (xin < Wo)
            rows = jnp.where(valid, xin, 0) * group_stride
            sel = jnp.zeros((in_groups, Wo), jnp.float32)
            sel = sel.at[rows, x].set(valid.astype(jnp.float32))
            T = T + sel[:, None, :, None] * w_hwio[dy, dx][None, :, None, :]
        mats.append(T.reshape(in_groups * C, Wo * Co))
    return jnp.stack(mats).astype(jnp.bfloat16)


def _fold_bn(st_blocks, gamma, beta, Wo, C, m_total):
    """Finalize two-pass training-mode BN stats and fold gamma/beta into a
    single per-channel scale/shift.  (The conv bias shifts mean by the same
    constant and cancels exactly, so it never needs to be added.)"""
    s = st_blocks.sum(axis=0).reshape(2, Wo, C).sum(axis=1)     # (2, C)
    mean = s[0] / m_total
    var = jnp.maximum(s[1] / m_total - mean * mean, 0.0)        # biased variance
    scale = gamma * jax.lax.rsqrt(var + EPS)
    shift = beta - mean * scale
    return scale, shift


def _pick_batch_block(n, per_sample_bytes, budget_bytes):
    """Largest B in {8,4,2,1} dividing N that fits the VMEM budget while still
    leaving >=2 grid blocks (so v7x's two TensorCores both get work)."""
    cap = max(1, int(budget_bytes) // max(int(per_sample_bytes), 1))
    for b in (8, 4, 2, 1):
        if b <= cap and n % b == 0 and n // b >= 2:
            return b
    b = min(n, cap)
    while n % b:
        b -= 1
    return b


@jax.jit
def down_pallas(x_nchw, params):
    """Forward of `Down` for NCHW input, returns NCHW output."""
    w1, b1, g1, be1, w2, b2, g2, be2 = params   # conv biases cancel under training BN
    N, Cin, H, W = x_nchw.shape
    Ho, Wo = H // 2, W // 2
    Mid = w1.shape[3]
    Cout = w2.shape[3]
    m_total = N * Ho * Wo

    K1 = (W - 1) * Cin           # stage-1 matmul K (uncompacted pooled slab)
    K2 = Wo * Mid                # stage-2 matmul K
    N1 = Wo * Mid                # stage-1 lane-dense output width
    N2 = Wo * Cout

    # NCHW -> lane-dense (N, H, W*Cin); XLA fuses transpose + reshape into one pass.
    x = jnp.transpose(x_nchw, (0, 2, 3, 1)).astype(jnp.float32).reshape(N, H, W * Cin)

    # Banded per-dy conv matrices (built once; horizontal taps, 'same' padding
    # and the stage-1 pooling compaction are all encoded here).
    w1b = _banded_tap_matrices(w1, Wo, group_stride=2, in_groups=W - 1)  # (3, K1, N1)
    w2b = _banded_tap_matrices(w2, Wo, group_stride=1, in_groups=Wo)     # (3, K2, N2)

    # ---- VMEM budget / samples-per-block (re-derived for v7x's 64 MiB) -----
    try:
        vmem_cap = int(pltpu.get_tpu_info().vmem_capacity_bytes)
    except Exception:                    # conservative default = v7x per-TC VMEM
        vmem_cap = 64 * 1024 * 1024
    per_sample = (2 * H * W * Cin * 4                       # x block (double buffered)
                  + (Ho + 2) * max(K1, K2) * 4              # padded scratch
                  + 2 * Ho * N1 * 2 + 2 * Ho * N2 * 4)      # y1 / y2 blocks
    B = _pick_batch_block(N, per_sample, budget_bytes=vmem_cap // 3)
    nblk = N // B

    cparams = pltpu.CompilerParams(
        dimension_semantics=("parallel",),                  # shard blocks across TCs
        vmem_limit_bytes=min(3 * vmem_cap // 4, 96 * 1024 * 1024),
    )

    # ---- stage 1: maxpool + conv1 (pre-BN) + per-block BN statistics -------
    y1, st1 = pl.pallas_call(
        pool_conv1_kernel,
        grid=(nblk,),
        in_specs=[
            pl.BlockSpec((B, H, W * Cin), lambda n: (n, 0, 0)),
            pl.BlockSpec((3, K1, N1), lambda n: (0, 0, 0)),
        ],
        out_specs=(
            pl.BlockSpec((B, Ho, N1), lambda n: (n, 0, 0)),
            pl.BlockSpec((1, 2, N1), lambda n: (n, 0, 0)),
        ),
        out_shape=(
            jax.ShapeDtypeStruct((N, Ho, N1), jnp.bfloat16),    # y1 in bf16
            jax.ShapeDtypeStruct((nblk, 2, N1), jnp.float32),
        ),
        scratch_shapes=[pltpu.VMEM((B, Ho + 2, K1), jnp.float32)],
        compiler_params=cparams,
    )(x, w1b)

    # ---- BN1 finalize + gamma/beta folded into one scale/shift FMA ---------
    scale1, shift1 = _fold_bn(st1, g1, be1, Wo, Mid, m_total)
    sc1 = jnp.tile(scale1, Wo).reshape(1, N1)
    sh1 = jnp.tile(shift1, Wo).reshape(1, N1)

    # ---- stage 2: BN1-apply + ReLU + conv2 (pre-BN) + BN2 statistics -------
    y2, st2 = pl.pallas_call(
        bn_relu_conv2_kernel,
        grid=(nblk,),
        in_specs=[
            pl.BlockSpec((B, Ho, N1), lambda n: (n, 0, 0)),
            pl.BlockSpec((1, N1), lambda n: (0, 0)),
            pl.BlockSpec((1, N1), lambda n: (0, 0)),
            pl.BlockSpec((3, K2, N2), lambda n: (0, 0, 0)),
        ],
        out_specs=(
            pl.BlockSpec((B, Ho, N2), lambda n: (n, 0, 0)),
            pl.BlockSpec((1, 2, N2), lambda n: (n, 0, 0)),
        ),
        out_shape=(
            jax.ShapeDtypeStruct((N, Ho, N2), jnp.float32),
            jax.ShapeDtypeStruct((nblk, 2, N2), jnp.float32),
        ),
        scratch_shapes=[pltpu.VMEM((B, Ho + 2, K2), jnp.float32)],
        compiler_params=cparams,
    )(y1, sc1, sh1, w2b)

    # ---- stage 3: BN2-apply + ReLU, fused by XLA with the NHWC->NCHW transpose
    scale2, shift2 = _fold_bn(st2, g2, be2, Wo, Cout, m_total)
    out = jnp.maximum(y2 * jnp.tile(scale2, Wo) + jnp.tile(shift2, Wo), 0.0)
    return jnp.transpose(out.reshape(N, Ho, Wo, Cout), (0, 3, 1, 2))


# --------------------------- pure-JAX reference ----------------------------
def down_reference(x_nchw, params):
    w1, b1, g1, be1, w2, b2, g2, be2 = params
    x = jnp.transpose(x_nchw, (0, 2, 3, 1)).astype(jnp.float32)
    N, H, W, Cin = x.shape
    Ho, Wo = H // 2, W // 2
    pooled = x.reshape(N, Ho, 2, Wo, 2, Cin).max(axis=(2, 4))

    def conv_bn_relu(h, w, b, g, beta):
        y = jax.lax.conv_general_dilated(
            h, w, window_strides=(1, 1), padding="SAME",
            dimension_numbers=("NHWC", "HWIO", "NHWC"))
        y = y + b
        mean = y.mean(axis=(0, 1, 2), keepdims=True)
        var = ((y - mean) ** 2).mean(axis=(0, 1, 2), keepdims=True)
        y = (y - mean) * jax.lax.rsqrt(var + EPS)
        y = y * g + beta
        return jnp.maximum(y, 0.0)

    h = conv_bn_relu(pooled, w1, b1, g1, be1)
    h = conv_bn_relu(h, w2, b2, g2, be2)
    return jnp.transpose(h, (0, 3, 1, 2))


# -------------------------- deterministic params ---------------------------
def init_params(key, cin, cout):
    mid = cout
    ks = jax.random.split(key, 8)
    w1 = 0.1 * jax.random.normal(ks[0], (3, 3, cin, mid), jnp.float32)   # HWIO
    b1 = 0.1 * jax.random.normal(ks[1], (mid,), jnp.float32)
    g1 = 1.0 + 0.1 * jax.random.normal(ks[2], (mid,), jnp.float32)
    be1 = 0.1 * jax.random.normal(ks[3], (mid,), jnp.float32)
    w2 = 0.1 * jax.random.normal(ks[4], (3, 3, mid, cout), jnp.float32)  # HWIO
    b2 = 0.1 * jax.random.normal(ks[5], (cout,), jnp.float32)
    g2 = 1.0 + 0.1 * jax.random.normal(ks[6], (cout,), jnp.float32)
    be2 = 0.1 * jax.random.normal(ks[7], (cout,), jnp.float32)
    return (w1, b1, g1, be1, w2, b2, g2, be2)


if __name__ == "__main__":
    key = jax.random.PRNGKey(0)
    kx, kp = jax.random.split(key)

    N, Cin, H, W = 2, 8, 16, 16
    Cout = 16

    x = jax.random.normal(kx, (N, Cin, H, W), jnp.float32)
    params = init_params(kp, Cin, Cout)

    out = jax.block_until_ready(down_pallas(x, params))
    assert out.shape == (N, Cout, H // 2, W // 2), out.shape

    ref = down_reference(x, params)
    max_err = jnp.max(jnp.abs(out - ref))
    # bf16 MXU operands + bf16 y1 storage (f32 accumulation/statistics)
    if not jnp.allclose(out, ref, atol=5e-2, rtol=5e-2):
        raise AssertionError(f"Pallas/ref mismatch, max abs err = {max_err}")

    print("KERNEL_OK")
</pallas_src>

<mosaic_0001>
module attributes {stable_mosaic.version = 11 : i64} {
  func.func @pool_conv1_kernel(%arg0: i32, %arg1: memref<1x16x128xf32, #tpu.memory_space<vmem>>, %arg2: memref<3x120x128xbf16, #tpu.memory_space<vmem>>, %arg3: memref<1x8x128xbf16, #tpu.memory_space<vmem>>, %arg4: memref<1x2x128xf32, #tpu.memory_space<vmem>>, %arg5: memref<1x10x120xf32, #tpu.memory_space<vmem>>) attributes {dimension_semantics = [#tpu.dimension_semantics<parallel>], iteration_bounds = array<i64: 2>, scalar_prefetch = 0 : i64, scratch_operands = 1 : i64, tpu.core_type = #tpu.core_type<tc>, window_params = [{transform_indices = @transform_0, window_bounds = array<i64: 1, 16, 128>}, {pipeline_mode = #tpu.pipeline_mode<synchronous>, transform_indices = @transform_1, window_bounds = array<i64: 3, 120, 128>}, {transform_indices = @transform_2, window_bounds = array<i64: 1, 8, 128>}, {transform_indices = @transform_3, window_bounds = array<i64: 1, 2, 128>}]} {
    %c0 = arith.constant 0 : index
    %c0_0 = arith.constant 0 : index
    %c0_1 = arith.constant 0 : index
    %0 = tpu.strided_load %arg1[%c0, %c0_0, %c0_1] {strides = array<i32: 1, 2, 1>} : memref<1x16x128xf32, #tpu.memory_space<vmem>>, vector<1x8x128xf32>
    %c0_2 = arith.constant 0 : index
    %c1 = arith.constant 1 : index
    %c0_3 = arith.constant 0 : index
    %1 = tpu.strided_load %arg1[%c0_2, %c1, %c0_3] {strides = array<i32: 1, 2, 1>} : memref<1x16x128xf32, #tpu.memory_space<vmem>>, vector<1x8x128xf32>
    %2 = arith.maximumf %0, %1 : vector<1x8x128xf32>
    %3 = vector.extract_strided_slice %2 {offsets = [0, 0, 0], sizes = [1, 8, 120], strides = [1, 1, 1]} : vector<1x8x128xf32> to vector<1x8x120xf32>
    %4 = vector.extract_strided_slice %2 {offsets = [0, 0, 8], sizes = [1, 8, 120], strides = [1, 1, 1]} : vector<1x8x128xf32> to vector<1x8x120xf32>
    %5 = arith.maximumf %3, %4 : vector<1x8x120xf32>
    %cst = arith.constant 0.000000e+00 : f32
    %6 = vector.broadcast %cst : f32 to vector<1x1x120xf32>
    %c0_4 = arith.constant 0 : index
    %c0_5 = arith.constant 0 : index
    %c0_6 = arith.constant 0 : index
    %7 = vector.load %arg5[%c0_4, %c0_5, %c0_6] : memref<1x10x120xf32, #tpu.memory_space<vmem>>, vector<1x1x120xf32>
    tpu.vector_store %arg5[%c0_4, %c0_5, %c0_6], %6 {strides = array<i32>} : memref<1x10x120xf32, #tpu.memory_space<vmem>>, vector<1x1x120xf32>,
    %cst_7 = arith.constant 0.000000e+00 : f32
    %8 = vector.broadcast %cst_7 : f32 to vector<1x1x120xf32>
    %c0_8 = arith.constant 0 : index
    %c9 = arith.constant 9 : index
    %c0_9 = arith.constant 0 : index
    %9 = vector.load %arg5[%c0_8, %c9, %c0_9] : memref<1x10x120xf32, #tpu.memory_space<vmem>>, vector<1x1x120xf32>
    tpu.vector_store %arg5[%c0_8, %c9, %c0_9], %8 {strides = array<i32>} : memref<1x10x120xf32, #tpu.memory_space<vmem>>, vector<1x1x120xf32>,
    %c0_10 = arith.constant 0 : index
    %c1_11 = arith.constant 1 : index
    %c0_12 = arith.constant 0 : index
    %10 = vector.load %arg5[%c0_10, %c1_11, %c0_12] : memref<1x10x120xf32, #tpu.memory_space<vmem>>, vector<1x8x120xf32>
    tpu.vector_store %arg5[%c0_10, %c1_11, %c0_12], %5 {strides = array<i32>} : memref<1x10x120xf32, #tpu.memory_space<vmem>>, vector<1x8x120xf32>,
    %cst_13 = arith.constant 0.000000e+00 : f32
    %11 = vector.broadcast %cst_13 : f32 to vector<8x128xf32>
    %c0_14 = arith.constant 0 : index
    %c0_15 = arith.constant 0 : index
    %c0_16 = arith.constant 0 : index
    %12 = vector.load %arg5[%c0_14, %c0_15, %c0_16] : memref<1x10x120xf32, #tpu.memory_space<vmem>>, vector<1x8x120xf32>
    %13 = vector.shape_cast %12 : vector<1x8x120xf32> to vector<8x120xf32>
    %14 = arith.truncf %13 : vector<8x120xf32> to vector<8x120xbf16>
    %c0_17 = arith.constant 0 : index
    %c0_18 = arith.constant 0 : index
    %c0_19 = arith.constant 0 : index
    %15 = vector.load %arg2[%c0_17, %c0_18, %c0_19] : memref<3x120x128xbf16, #tpu.memory_space<vmem>>, vector<1x120x128xbf16>
    %16 = vector.shape_cast %15 : vector<1x120x128xbf16> to vector<120x128xbf16>
    %cst_20 = arith.constant dense<0.000000e+00> : vector<8x128xf32>
    %17 = tpu.matmul %14, %16, %cst_20 {dimension_numbers = #tpu.dot_dimension_numbers<[1], [0], [0], [1], [0, 0, 1, 1], [], []>} : vector<8x120xbf16>, vector<120x128xbf16>, vector<8x128xf32> -> vector<8x128xf32>
    %18 = arith.addf %11, %17 : vector<8x128xf32>
    %c0_21 = arith.constant 0 : index
    %c1_22 = arith.constant 1 : index
    %c0_23 = arith.constant 0 : index
    %19 = vector.load %arg5[%c0_21, %c1_22, %c0_23] : memref<1x10x120xf32, #tpu.memory_space<vmem>>, vector<1x8x120xf32>
    %20 = vector.shape_cast %19 : vector<1x8x120xf32> to vector<8x120xf32>
    %21 = arith.truncf %20 : vector<8x120xf32> to vector<8x120xbf16>
    %c1_24 = arith.constant 1 : index
    %c0_25 = arith.constant 0 : index
    %c0_26 = arith.constant 0 : index
    %22 = vector.load %arg2[%c1_24, %c0_25, %c0_26] : memref<3x120x128xbf16, #tpu.memory_space<vmem>>, vector<1x120x128xbf16>
    %23 = vector.shape_cast %22 : vector<1x120x128xbf16> to vector<120x128xbf16>
    %cst_27 = arith.constant dense<0.000000e+00> : vector<8x128xf32>
    %24 = tpu.matmul %21, %23, %cst_27 {dimension_numbers = #tpu.dot_dimension_numbers<[1], [0], [0], [1], [0, 0, 1, 1], [], []>} : vector<8x120xbf16>, vector<120x128xbf16>, vector<8x128xf32> -> vector<8x128xf32>
    %25 = arith.addf %18, %24 : vector<8x128xf32>
    %c0_28 = arith.constant 0 : index
    %c2 = arith.constant 2 : index
    %c0_29 = arith.constant 0 : index
    %26 = vector.load %arg5[%c0_28, %c2, %c0_29] : memref<1x10x120xf32, #tpu.memory_space<vmem>>, vector<1x8x120xf32>
    %27 = vector.shape_cast %26 : vector<1x8x120xf32> to vector<8x120xf32>
    %28 = arith.truncf %27 : vector<8x120xf32> to vector<8x120xbf16>
    %c2_30 = arith.constant 2 : index
    %c0_31 = arith.constant 0 : index
    %c0_32 = arith.constant 0 : index
    %29 = vector.load %arg2[%c2_30, %c0_31, %c0_32] : memref<3x120x128xbf16, #tpu.memory_space<vmem>>, vector<1x120x128xbf16>
    %30 = vector.shape_cast %29 : vector<1x120x128xbf16> to vector<120x128xbf16>
    %cst_33 = arith.constant dense<0.000000e+00> : vector<8x128xf32>
    %31 = tpu.matmul %28, %30, %cst_33 {dimension_numbers = #tpu.dot_dimension_numbers<[1], [0], [0], [1], [0, 0, 1, 1], [], []>} : vector<8x120xbf16>, vector<120x128xbf16>, vector<8x128xf32> -> vector<8x128xf32>
    %32 = arith.addf %25, %31 : vector<8x128xf32>
    %cst_34 = arith.constant dense<0.000000e+00> : vector<128xf32>
    %33 = vector.multi_reduction <add>, %32, %cst_34 [0] : vector<8x128xf32> to vector<128xf32>
    %34 = vector.shape_cast %33 : vector<128xf32> to vector<1x128xf32>
    %35 = vector.shape_cast %34 : vector<1x128xf32> to vector<1x1x128xf32>
    %c0_35 = arith.constant 0 : index
    %c0_36 = arith.constant 0 : index
    %c0_37 = arith.constant 0 : index
    %36 = vector.load %arg4[%c0_35, %c0_36, %c0_37] : memref<1x2x128xf32, #tpu.memory_space<vmem>>, vector<1x1x128xf32>
    tpu.vector_store %arg4[%c0_35, %c0_36, %c0_37], %35 {strides = array<i32>} : memref<1x2x128xf32, #tpu.memory_space<vmem>>, vector<1x1x128xf32>,
    %37 = arith.mulf %32, %32 : vector<8x128xf32>
    %cst_38 = arith.constant dense<0.000000e+00> : vector<128xf32>
    %38 = vector.multi_reduction <add>, %37, %cst_38 [0] : vector<8x128xf32> to vector<128xf32>
    %39 = vector.shape_cast %38 : vector<128xf32> to vector<1x128xf32>
    %40 = vector.shape_cast %39 : vector<1x128xf32> to vector<1x1x128xf32>
    %c0_39 = arith.constant 0 : index
    %c1_40 = arith.constant 1 : index
    %c0_41 = arith.constant 0 : index
    %41 = vector.load %arg4[%c0_39, %c1_40, %c0_41] : memref<1x2x128xf32, #tpu.memory_space<vmem>>, vector<1x1x128xf32>
    tpu.vector_store %arg4[%c0_39, %c1_40, %c0_41], %40 {strides = array<i32>} : memref<1x2x128xf32, #tpu.memory_space<vmem>>, vector<1x1x128xf32>,
    %42 = vector.shape_cast %32 : vector<8x128xf32> to vector<1x8x128xf32>
    %43 = arith.truncf %42 : vector<1x8x128xf32> to vector<1x8x128xbf16>
    %c0_42 = arith.constant 0 : index
    %c0_43 = arith.constant 0 : index
    %c0_44 = arith.constant 0 : index
    %44 = vector.load %arg3[%c0_42, %c0_43, %c0_44] : memref<1x8x128xbf16, #tpu.memory_space<vmem>>, vector<1x8x128xbf16>
    tpu.vector_store %arg3[%c0_42, %c0_43, %c0_44], %43 {strides = array<i32>} : memref<1x8x128xbf16, #tpu.memory_space<vmem>>, vector<1x8x128xbf16>,
    return
  }
  func.func @transform_0(%arg0: i32) -> (i32, i32, i32) {
    %c0_i32 = arith.constant 0 : i32
    %c0_i32_0 = arith.constant 0 : i32
    %c0_i32_1 = arith.constant 0 : i32
    return %arg0, %c0_i32, %c0_i32_0 : i32, i32, i32
  }
  func.func @transform_1(%arg0: i32) -> (i32, i32, i32) {
    %c0_i32 = arith.constant 0 : i32
    %c0_i32_0 = arith.constant 0 : i32
    %c0_i32_1 = arith.constant 0 : i32
    %c0_i32_2 = arith.constant 0 : i32
    return %c0_i32, %c0_i32_0, %c0_i32_1 : i32, i32, i32
  }
  func.func @transform_2(%arg0: i32) -> (i32, i32, i32) {
    %c0_i32 = arith.constant 0 : i32
    %c0_i32_0 = arith.constant 0 : i32
    %c0_i32_1 = arith.constant 0 : i32
    return %arg0, %c0_i32, %c0_i32_0 : i32, i32, i32
  }
  func.func @transform_3(%arg0: i32) -> (i32, i32, i32) {
    %c0_i32 = arith.constant 0 : i32
    %c0_i32_0 = arith.constant 0 : i32
    %c0_i32_1 = arith.constant 0 : i32
    return %arg0, %c0_i32, %c0_i32_0 : i32, i32, i32
  }
}

module attributes {stable_mosaic.version = 11 : i64} {
  func.func @bn_relu_conv2_kernel(%arg0: i32, %arg1: memref<1x8x128xbf16, #tpu.memory_space<vmem>>, %arg2: memref<1x128xf32, #tpu.memory_space<vmem>>, %arg3: memref<1x128xf32, #tpu.memory_space<vmem>>, %arg4: memref<3x128x128xbf16, #tpu.memory_space<vmem>>, %arg5: memref<1x8x128xf32, #tpu.memory_space<vmem>>, %arg6: memref<1x2x128xf32, #tpu.memory_space<vmem>>, %arg7: memref<1x10x128xf32, #tpu.memory_space<vmem>>) attributes {dimension_semantics = [#tpu.dimension_semantics<parallel>], iteration_bounds = array<i64: 2>, scalar_prefetch = 0 : i64, scratch_operands = 1 : i64, tpu.core_type = #tpu.core_type<tc>, window_params = [{transform_indices = @transform_0, window_bounds = array<i64: 1, 8, 128>}, {pipeline_mode = #tpu.pipeline_mode<synchronous>, transform_indices = @transform_1, window_bounds = array<i64: 1, 128>}, {pipeline_mode = #tpu.pipeline_mode<synchronous>, transform_indices = @transform_2, window_bounds = array<i64: 1, 128>}, {pipeline_mode = #tpu.pipeline_mode<synchronous>, transform_indices = @transform_3, window_bounds = array<i64: 3, 128, 128>}, {transform_indices = @transform_4, window_bounds = array<i64: 1, 8, 128>}, {transform_indices = @transform_5, window_bounds = array<i64: 1, 2, 128>}]} {
    %c0 = arith.constant 0 : index
    %c0_0 = arith.constant 0 : index
    %c0_1 = arith.constant 0 : index
    %0 = vector.load %arg1[%c0, %c0_0, %c0_1] : memref<1x8x128xbf16, #tpu.memory_space<vmem>>, vector<1x8x128xbf16>
    %1 = arith.extf %0 : vector<1x8x128xbf16> to vector<1x8x128xf32>
    %c0_2 = arith.constant 0 : index
    %c0_3 = arith.constant 0 : index
    %2 = vector.load %arg2[%c0_2, %c0_3] : memref<1x128xf32, #tpu.memory_space<vmem>>, vector<1x128xf32>
    %3 = vector.shape_cast %2 : vector<1x128xf32> to vector<1x1x128xf32>
    %4 = vector.broadcast %3 : vector<1x1x128xf32> to vector<1x8x128xf32>
    %5 = arith.mulf %1, %4 : vector<1x8x128xf32>
    %c0_4 = arith.constant 0 : index
    %c0_5 = arith.constant 0 : index
    %6 = vector.load %arg3[%c0_4, %c0_5] : memref<1x128xf32, #tpu.memory_space<vmem>>, vector<1x128xf32>
    %7 = vector.shape_cast %6 : vector<1x128xf32> to vector<1x1x128xf32>
    %8 = vector.broadcast %7 : vector<1x1x128xf32> to vector<1x8x128xf32>
    %9 = arith.addf %5, %8 : vector<1x8x128xf32>
    %cst = arith.constant 0.000000e+00 : f32
    %10 = vector.broadcast %cst : f32 to vector<1x8x128xf32>
    %11 = arith.maximumf %9, %10 : vector<1x8x128xf32>
    %cst_6 = arith.constant 0.000000e+00 : f32
    %12 = vector.broadcast %cst_6 : f32 to vector<1x1x128xf32>
    %c0_7 = arith.constant 0 : index
    %c0_8 = arith.constant 0 : index
    %c0_9 = arith.constant 0 : index
    %13 = vector.load %arg7[%c0_7, %c0_8, %c0_9] : memref<1x10x128xf32, #tpu.memory_space<vmem>>, vector<1x1x128xf32>
    tpu.vector_store %arg7[%c0_7, %c0_8, %c0_9], %12 {strides = array<i32>} : memref<1x10x128xf32, #tpu.memory_space<vmem>>, vector<1x1x128xf32>,
    %cst_10 = arith.constant 0.000000e+00 : f32
    %14 = vector.broadcast %cst_10 : f32 to vector<1x1x128xf32>
    %c0_11 = arith.constant 0 : index
    %c9 = arith.constant 9 : index
    %c0_12 = arith.constant 0 : index
    %15 = vector.load %arg7[%c0_11, %c9, %c0_12] : memref<1x10x128xf32, #tpu.memory_space<vmem>>, vector<1x1x128xf32>
    tpu.vector_store %arg7[%c0_11, %c9, %c0_12], %14 {strides = array<i32>} : memref<1x10x128xf32, #tpu.memory_space<vmem>>, vector<1x1x128xf32>,
    %c0_13 = arith.constant 0 : index
    %c1 = arith.constant 1 : index
    %c0_14 = arith.constant 0 : index
    %16 = vector.load %arg7[%c0_13, %c1, %c0_14] : memref<1x10x128xf32, #tpu.memory_space<vmem>>, vector<1x8x128xf32>
    tpu.vector_store %arg7[%c0_13, %c1, %c0_14], %11 {strides = array<i32>} : memref<1x10x128xf32, #tpu.memory_space<vmem>>, vector<1x8x128xf32>,
    %cst_15 = arith.constant 0.000000e+00 : f32
    %17 = vector.broadcast %cst_15 : f32 to vector<8x128xf32>
    %c0_16 = arith.constant 0 : index
    %c0_17 = arith.constant 0 : index
    %c0_18 = arith.constant 0 : index
    %18 = vector.load %arg7[%c0_16, %c0_17, %c0_18] : memref<1x10x128xf32, #tpu.memory_space<vmem>>, vector<1x8x128xf32>
    %19 = vector.shape_cast %18 : vector<1x8x128xf32> to vector<8x128xf32>
    %20 = arith.truncf %19 : vector<8x128xf32> to vector<8x128xbf16>
    %c0_19 = arith.constant 0 : index
    %c0_20 = arith.constant 0 : index
    %c0_21 = arith.constant 0 : index
    %21 = vector.load %arg4[%c0_19, %c0_20, %c0_21] : memref<3x128x128xbf16, #tpu.memory_space<vmem>>, vector<1x128x128xbf16>
    %22 = vector.shape_cast %21 : vector<1x128x128xbf16> to vector<128x128xbf16>
    %cst_22 = arith.constant dense<0.000000e+00> : vector<8x128xf32>
    %23 = tpu.matmul %20, %22, %cst_22 {dimension_numbers = #tpu.dot_dimension_numbers<[1], [0], [0], [1], [0, 0, 1, 1], [], []>} : vector<8x128xbf16>, vector<128x128xbf16>, vector<8x128xf32> -> vector<8x128xf32>
    %24 = arith.addf %17, %23 : vector<8x128xf32>
    %c0_23 = arith.constant 0 : index
    %c1_24 = arith.constant 1 : index
    %c0_25 = arith.constant 0 : index
    %25 = vector.load %arg7[%c0_23, %c1_24, %c0_25] : memref<1x10x128xf32, #tpu.memory_space<vmem>>, vector<1x8x128xf32>
    %26 = vector.shape_cast %25 : vector<1x8x128xf32> to vector<8x128xf32>
    %27 = arith.truncf %26 : vector<8x128xf32> to vector<8x128xbf16>
    %c1_26 = arith.constant 1 : index
    %c0_27 = arith.constant 0 : index
    %c0_28 = arith.constant 0 : index
    %28 = vector.load %arg4[%c1_26, %c0_27, %c0_28] : memref<3x128x128xbf16, #tpu.memory_space<vmem>>, vector<1x128x128xbf16>
    %29 = vector.shape_cast %28 : vector<1x128x128xbf16> to vector<128x128xbf16>
    %cst_29 = arith.constant dense<0.000000e+00> : vector<8x128xf32>
    %30 = tpu.matmul %27, %29, %cst_29 {dimension_numbers = #tpu.dot_dimension_numbers<[1], [0], [0], [1], [0, 0, 1, 1], [], []>} : vector<8x128xbf16>, vector<128x128xbf16>, vector<8x128xf32> -> vector<8x128xf32>
    %31 = arith.addf %24, %30 : vector<8x128xf32>
    %c0_30 = arith.constant 0 : index
    %c2 = arith.constant 2 : index
    %c0_31 = arith.constant 0 : index
    %32 = vector.load %arg7[%c0_30, %c2, %c0_31] : memref<1x10x128xf32, #tpu.memory_space<vmem>>, vector<1x8x128xf32>
    %33 = vector.shape_cast %32 : vector<1x8x128xf32> to vector<8x128xf32>
    %34 = arith.truncf %33 : vector<8x128xf32> to vector<8x128xbf16>
    %c2_32 = arith.constant 2 : index
    %c0_33 = arith.constant 0 : index
    %c0_34 = arith.constant 0 : index
    %35 = vector.load %arg4[%c2_32, %c0_33, %c0_34] : memref<3x128x128xbf16, #tpu.memory_space<vmem>>, vector<1x128x128xbf16>
    %36 = vector.shape_cast %35 : vector<1x128x128xbf16> to vector<128x128xbf16>
    %cst_35 = arith.constant dense<0.000000e+00> : vector<8x128xf32>
    %37 = tpu.matmul %34, %36, %cst_35 {dimension_numbers = #tpu.dot_dimension_numbers<[1], [0], [0], [1], [0, 0, 1, 1], [], []>} : vector<8x128xbf16>, vector<128x128xbf16>, vector<8x128xf32> -> vector<8x128xf32>
    %38 = arith.addf %31, %37 : vector<8x128xf32>
    %cst_36 = arith.constant dense<0.000000e+00> : vector<128xf32>
    %39 = vector.multi_reduction <add>, %38, %cst_36 [0] : vector<8x128xf32> to vector<128xf32>
    %40 = vector.shape_cast %39 : vector<128xf32> to vector<1x128xf32>
    %41 = vector.shape_cast %40 : vector<1x128xf32> to vector<1x1x128xf32>
    %c0_37 = arith.constant 0 : index
    %c0_38 = arith.constant 0 : index
    %c0_39 = arith.constant 0 : index
    %42 = vector.load %arg6[%c0_37, %c0_38, %c0_39] : memref<1x2x128xf32, #tpu.memory_space<vmem>>, vector<1x1x128xf32>
    tpu.vector_store %arg6[%c0_37, %c0_38, %c0_39], %41 {strides = array<i32>} : memref<1x2x128xf32, #tpu.memory_space<vmem>>, vector<1x1x128xf32>,
    %43 = arith.mulf %38, %38 : vector<8x128xf32>
    %cst_40 = arith.constant dense<0.000000e+00> : vector<128xf32>
    %44 = vector.multi_reduction <add>, %43, %cst_40 [0] : vector<8x128xf32> to vector<128xf32>
    %45 = vector.shape_cast %44 : vector<128xf32> to vector<1x128xf32>
    %46 = vector.shape_cast %45 : vector<1x128xf32> to vector<1x1x128xf32>
    %c0_41 = arith.constant 0 : index
    %c1_42 = arith.constant 1 : index
    %c0_43 = arith.constant 0 : index
    %47 = vector.load %arg6[%c0_41, %c1_42, %c0_43] : memref<1x2x128xf32, #tpu.memory_space<vmem>>, vector<1x1x128xf32>
    tpu.vector_store %arg6[%c0_41, %c1_42, %c0_43], %46 {strides = array<i32>} : memref<1x2x128xf32, #tpu.memory_space<vmem>>, vector<1x1x128xf32>,
    %48 = vector.shape_cast %38 : vector<8x128xf32> to vector<1x8x128xf32>
    %c0_44 = arith.constant 0 : index
    %c0_45 = arith.constant 0 : index
    %c0_46 = arith.constant 0 : index
    %49 = vector.load %arg5[%c0_44, %c0_45, %c0_46] : memref<1x8x128xf32, #tpu.memory_space<vmem>>, vector<1x8x128xf32>
    tpu.vector_store %arg5[%c0_44, %c0_45, %c0_46], %48 {strides = array<i32>} : memref<1x8x128xf32, #tpu.memory_space<vmem>>, vector<1x8x128xf32>,
    return
  }
  func.func @transform_0(%arg0: i32) -> (i32, i32, i32) {
    %c0_i32 = arith.constant 0 : i32
    %c0_i32_0 = arith.constant 0 : i32
    %c0_i32_1 = arith.constant 0 : i32
    return %arg0, %c0_i32, %c0_i32_0 : i32, i32, i32
  }
  func.func @transform_1(%arg0: i32) -> (i32, i32) {
    %c0_i32 = arith.constant 0 : i32
    %c0_i32_0 = arith.constant 0 : i32
    %c0_i32_1 = arith.constant 0 : i32
    return %c0_i32, %c0_i32_0 : i32, i32
  }
  func.func @transform_2(%arg0: i32) -> (i32, i32) {
    %c0_i32 = arith.constant 0 : i32
    %c0_i32_0 = arith.constant 0 : i32
    %c0_i32_1 = arith.constant 0 : i32
    return %c0_i32, %c0_i32_0 : i32, i32
  }
  func.func @transform_3(%arg0: i32) -> (i32, i32, i32) {
    %c0_i32 = arith.constant 0 : i32
    %c0_i32_0 = arith.constant 0 : i32
    %c0_i32_1 = arith.constant 0 : i32
    %c0_i32_2 = arith.constant 0 : i32
    return %c0_i32, %c0_i32_0, %c0_i32_1 : i32, i32, i32
  }
  func.func @transform_4(%arg0: i32) -> (i32, i32, i32) {
    %c0_i32 = arith.constant 0 : i32
    %c0_i32_0 = arith.constant 0 : i32
    %c0_i32_1 = arith.constant 0 : i32
    return %arg0, %c0_i32, %c0_i32_0 : i32, i32, i32
  }
  func.func @transform_5(%arg0: i32) -> (i32, i32, i32) {
    %c0_i32 = arith.constant 0 : i32
    %c0_i32_0 = arith.constant 0 : i32
    %c0_i32_1 = arith.constant 0 : i32
    return %arg0, %c0_i32, %c0_i32_0 : i32, i32, i32
  }
}

</mosaic_0001>

<bundles_post_ra>
// kernel: tile.23
= control target key start
LH: loop header
LB: loop body
LE: loop exit
PB: predicated region body
PF: predicated region fallthrough
CT: control target
= control target key end

     0   :  { %s22_s0 = inlined_call_operand.vmem [shape: f32[16], index: 0, kind: input, shape index: {}]   ;;  %s23_s1 = inlined_call_operand.vmem [shape: f32[8,16], index: 1, kind: output, shape index: {}]  }
   0x1   :  { %v4_v0 = vld [vmem:[%s22_s0] ss:$0 sm:$0xff] }
   0x2   :  { %5 = vst [vmem:[%s23_s1] sm:$0xff] %v4_v0 }

// kernel: tile.24
= control target key start
LH: loop header
LB: loop body
LE: loop exit
PB: predicated region body
PF: predicated region fallthrough
CT: control target
= control target key end

     0   :  { %s69_s10 = smov 112   ;;  %s70_s11 = smov 80   ;;  %vm3_vm0 = vcmask 130048   ;;  %vm9_vm1 = vcmask 1048448   ;;  %vm15_vm2 = vcmask 917248   ;;  %vm21_vm3 = vcmask 786048   ;;  %s113_s0 = inlined_call_operand.vmem [shape: f32[8,16], index: 0, kind: input, shape index: {}]   ;;  %s114_s1 = inlined_call_operand.vmem [shape: f32[1,128], index: 1, kind: output, shape index: {}]  }
   0x1   :  { %v55_v0 = vld [vmem:[%s113_s0 + $0x7] sm:$0x1]   ;;  %v57_v1 = vld [vmem:[%s113_s0 + $0x5] sm:$0x1]   ;;  %v56_v2 = vld [vmem:[%s113_s0 + $0x6] sm:$0x1]  }
   0x2   :  { %7 = vrot.lane.b32.xlu0 %v55_v0, %s69_s10  ;;  %19 = vrot.lane.b32.xlu1 %v57_v1, %s70_s11  ;;  %v58_v3 = vld [vmem:[%s113_s0 + $0x4] sm:$0x1]   ;;  %v2_v4 = vld [vmem:[%s113_s0] sm:$0x1]   ;;  %s71_s18 = smov 96   ;;  %s72_s19 = smov 64  }
   0x3   :  { %4 = vst.msk [vmem:[#allocation0] sm:$0x1] %vm3_vm0, %v2_v4   ;;  %v59_v5 = vld [vmem:[%s113_s0 + $0x3] sm:$0x1]   ;;  %v60_v6 = vld [vmem:[%s113_s0 + $0x2] sm:$0x1]  }
   0x4   :  { %s73_s24 = smov 48   ;;  %s74_s25 = smov 32   ;;  %v61_v7 = vld [vmem:[%s113_s0 + $0x1] sm:$0x1]   ;;  %vm27_vm4 = vcmask 654848   ;;  %vm33_vm5 = vcmask 523648  }
   0x5   :  { %s75_s0 = smov 16   ;;  %vm39_vm6 = vcmask 392448   ;;  %vm45_vm7 = vcmask 261248  }
   0x6   :  { %13 = vrot.lane.b32.xlu0 %v56_v2, %s71_s18  ;;  %25 = vrot.lane.b32.xlu1 %v58_v3, %s72_s19 }
   0xa   :  { %31 = vrot.lane.b32.xlu0 %v59_v5, %s73_s24  ;;  %37 = vrot.lane.b32.xlu1 %v60_v6, %s74_s25 }
   0xe   :  { %43 = vrot.lane.b32.xlu0 %v61_v7, %s75_s0 }
  0x74   :  { %v8_v8 = vpop.permute.xlu0 %7   ;;  %v20_v9 = vpop.permute.xlu1 %19  }
  0x75   :  { %10 = vst.msk [vmem:[#allocation0] sm:$0x1] %vm9_vm1, %v8_v8  }
  0x78   :  { %v14_v10 = vpop.permute.xlu0 %13   ;;  %v26_v11 = vpop.permute.xlu1 %25  }
  0x79   :  { %16 = vst.msk [vmem:[#allocation0] sm:$0x1] %vm15_vm2, %v14_v10  }
  0x7a   :  { %22 = vst.msk [vmem:[#allocation0] sm:$0x1] %vm21_vm3, %v20_v9  }
  0x7b   :  { %28 = vst.msk [vmem:[#allocation0] sm:$0x1] %vm27_vm4, %v26_v11  }
  0x7c   :  { %v32_v12 = vpop.permute.xlu0 %31   ;;  %v38_v13 = vpop.permute.xlu1 %37  }
  0x7d   :  { %34 = vst.msk [vmem:[#allocation0] sm:$0x1] %vm33_vm5, %v32_v12  }
  0x7e   :  { %40 = vst.msk [vmem:[#allocation0] sm:$0x1] %vm39_vm6, %v38_v13  }
  0x80   :  { %v44_v14 = vpop.permute.xlu0 %43  }
  0x81   :  { %46 = vst.msk [vmem:[#allocation0] sm:$0x1] %vm45_vm7, %v44_v14  }
  0x88   :  { %v51_v15 = vld [vmem:[#allocation0] sm:$0x1] }
  0x89   :  { %54 = vst [vmem:[%s114_s1] sm:$0x1] %v51_v15 }

// kernel: down_pallas.2
= control target key start
LH: loop header
LB: loop body
LE: loop exit
PB: predicated region body
PF: predicated region fallthrough
CT: control target
= control target key end

     0   :  { %s847_s12 = smov 0   ;;  %s983_s0 = inlined_call_operand.vmem [shape: f32[2,16,128], index: 0, kind: input, shape index: {}]   ;;  %s984_s1 = inlined_call_operand.vmem [shape: bf16[3,120,128], index: 1, kind: input, shape index: {}]   ;;  %s985_s2 = inlined_call_operand.vmem [shape: bf16[2,8,128], index: 2, kind: output, shape index: {0}]   ;;  %s986_s3 = inlined_call_operand.vmem [shape: f32[2,2,128], index: 3, kind: output, shape index: {1}]  }
   0x1 LB: > { %s624_s13 = sadd.s32 4294967295, %s822_s12   ;;  %p628_p0 = scmp.ge.s32.totalorder %s822_s12, 1  ;;  %s822_s12 = sphi %s847_s12, %s14_s12  }
   0x2   : > { %p140_p1 = scmp.lt.s32.totalorder %s822_s12, 3 }
   0x4   : > { %p141_p2 = pnand %p628_p0, %p140_p1 }
   0x5   : > { %p167_p3 = scmp.lt.s32.totalorder (!%p141_p2), %s624_s13, 1  ;;  %s825_s30 = smov (!%p141_p2), 120  }
   0x6   : > { %144 = sbr.rel (%p141_p2) target bundleno = 387 (0x183), region = 28 }
   0xb   : > { %vm278_vm0 = vcmask 1043456   ;;  %v824_v0 = vmov 0.0   ;;  %v792_v1 = vld [vmem:[%s984_s1 + $0x74] ss:$0 sps:$4 sm:$0xff]   ;;  %v793_v2 = vld [vmem:[%s984_s1 + $0x38] ss:$0 sps:$4 sm:$0xff]  }
   0xc   : > { %721 = vmatprep.subr.bf16.mxu0 %v824_v0  ;;  %741 = vmatprep.subr.bf16.mxu1 %v824_v0  ;;  %s988_s13 = smov (!%p167_p3, %s624_s13), 1  ;;  %v280_v3 = vsel %vm278_vm0, %v792_v1, 0  ;;  %v371_v4 = vsel %vm278_vm0, %v793_v2, 0  ;;  %v794_v5 = vld [vmem:[%s984_s1 + $0x6c] sm:$0xff]   ;;  %v796_v10 = vld [vmem:[%s984_s1 + $0x64] sm:$0xff]   ;;  %vm190_vm1 = vcmask 974848  }
   0xd   : > { %s693_s18 = sshll.u32 %s988_s13, 4  ;;  %722 = vmatpush3.bf16.msra.mxu0 %v280_v3  ;;  %742 = vmatpush3.bf16.msra.mxu1 %v371_v4  ;;  %v795_v6 = vld [vmem:[%s984_s1 + $0x30] sm:$0xff]   ;;  %v797_v11 = vld [vmem:[%s984_s1 + $0x28] sm:$0xff]   ;;  %191 = vst.msk [vmem:[#allocation2] sm:$0x1] %vm190_vm1, %v824_v0  ;;  %vm826_vm2 = vmmov 0  }
   0xe   : > { %s171_s25 = scalar_lea.vmem %s983_s0, %s693_s18  ;;  %723 = vmatprep.subr.bf16.mxu0 %v824_v0  ;;  %743 = vmatprep.subr.bf16.mxu1 %v824_v0  ;;  %192 = vst.msk [vmem:[#allocation2 + $0x9] sm:$0x1] %vm190_vm1, %v824_v0  ;;  %v798_v12 = vld [vmem:[%s984_s1 + $0x5c] sm:$0xff]   ;;  %v800_v14 = vld [vmem:[%s984_s1 + $0x54] sm:$0xff]   ;;  %v802_v16 = vld [vmem:[%s984_s1 + $0x4c] sm:$0xff]   ;;  %vm193_vm3 = vcmask 982016  }
   0xf   : > { %v181_v7 = vld [vmem:[%s171_s25] ss:$2 sm:$0xff]  ;;  %v633_v8 = vld [vmem:[%s171_s25 + $0x1] ss:$2 sm:$0xff]  ;;  %737 = vmatprep.mubr.msk.bf16.mxu0 %vm826_vm2, %v824_v0  ;;  %757 = vmatprep.mubr.msk.bf16.mxu1 %vm826_vm2, %v824_v0  ;;  %v801_v15 = vld [vmem:[%s984_s1 + $0x18] sm:$0xff]   ;;  %s631_s17 = sshll.u32 %s988_s13, 2 }
  0x10   : > { %v184_v9 = vmax.f32 %v181_v7, %v633_v8  ;;  %v799_v13 = vld [vmem:[%s984_s1 + $0x20] sm:$0xff]   ;;  %v803_v17 = vld [vmem:[%s984_s1 + $0x10] sm:$0xff]   ;;  %v805_v19 = vld [vmem:[%s984_s1 + $0x8] sm:$0xff]   ;;  %s175_s20 = scalar_lea.vmem %s985_s2, %s631_s17  ;;  %s632_s21 = sshll.u32 %s988_s13, 1 }
  0x11   : > { %724 = vmatpush3.bf16.msra.mxu0 %v794_v5  ;;  %744 = vmatpush3.bf16.msra.mxu1 %v795_v6  ;;  %v804_v18 = vld [vmem:[%s984_s1 + $0x44] sm:$0xff]   ;;  %v806_v20 = vld [vmem:[%s984_s1 + $0x3c] sm:$0xff]   ;;  %v808_v24 = vld [vmem:[%s984_s1 + $0xb0] ss:$0 sps:$4 sm:$0xff]   ;;  %s179_s24 = scalar_lea.vmem %s986_s3, %s632_s21 }
  0x12   : > { %186 = vrot.lane.b32.xlu0 %v184_v9, %s825_s30  ;;  %725 = vmatprep.subr.bf16.mxu0 %v824_v0  ;;  %v807_v21 = vld [vmem:[%s984_s1] sm:$0xff]   ;;  %v480_v29 = vsel %vm278_vm0, %v808_v24, 0  ;;  %v809_v30 = vld [vmem:[%s984_s1 + $0xa8] sm:$0xff]   ;;  %v811_v32 = vld [vmem:[%s984_s1 + $0x98] sm:$0xff]  }
  0x13   : > { %745 = vmatprep.subr.bf16.mxu1 %v824_v0  ;;  %v810_v31 = vld [vmem:[%s984_s1 + $0xa0] sm:$0xff]   ;;  %v812_v33 = vld [vmem:[%s984_s1 + $0x90] sm:$0xff]   ;;  %v813_v34 = vld [vmem:[%s984_s1 + $0x88] sm:$0xff]  }
  0x14   : > { %v814_v35 = vld [vmem:[%s984_s1 + $0x80] sm:$0xff]   ;;  %v815_v36 = vld [vmem:[%s984_s1 + $0x78] sm:$0xff]  }
  0x15   : > { %726 = vmatpush3.bf16.msra.mxu0 %v796_v10  ;;  %746 = vmatpush3.bf16.msra.mxu1 %v797_v11 }
  0x16   : > { %727 = vmatprep.subr.bf16.mxu0 %v824_v0  ;;  %747 = vmatprep.subr.bf16.mxu1 %v824_v0 }
  0x19   : > { %728 = vmatpush3.bf16.msra.mxu0 %v798_v12  ;;  %748 = vmatpush3.bf16.msra.mxu1 %v799_v13 }
  0x1a   : > { %729 = vmatprep.subr.bf16.mxu0 %v824_v0  ;;  %749 = vmatprep.subr.bf16.mxu1 %v824_v0 }
  0x1d   : > { %730 = vmatpush3.bf16.msra.mxu0 %v800_v14  ;;  %750 = vmatpush3.bf16.msra.mxu1 %v801_v15 }
  0x1e   : > { %731 = vmatprep.subr.bf16.mxu0 %v824_v0  ;;  %751 = vmatprep.subr.bf16.mxu1 %v824_v0 }
  0x21   : > { %732 = vmatpush3.bf16.msra.mxu0 %v802_v16  ;;  %752 = vmatpush3.bf16.msra.mxu1 %v803_v17 }
  0x22   : > { %733 = vmatprep.subr.bf16.mxu0 %v824_v0  ;;  %753 = vmatprep.subr.bf16.mxu1 %v824_v0 }
  0x25   : > { %734 = vmatpush3.bf16.msra.mxu0 %v804_v18  ;;  %754 = vmatpush3.bf16.msra.mxu1 %v805_v19 }
  0x26   : > { %735 = vmatprep.subr.bf16.mxu0 %v824_v0  ;;  %755 = vmatprep.subr.bf16.mxu1 %v824_v0 }
  0x29   : > { %736 = vmatpush3.bf16.msra.mxu0 %v806_v20  ;;  %756 = vmatpush3.bf16.msra.mxu1 %v807_v21 }
  0x2a   : > { %761 = vmatprep.subr.bf16.mxu0 %v824_v0 }
  0x84   : > { %v187_v22 = vpop.permute.xlu0 %186 }
  0x85   : > { %v189_v23 = vmax.f32 %v184_v9, %v187_v22 }
  0x87   : > { %194 = vst.msk [vmem:[#allocation2 + $0x1] sm:$0xff] %vm193_vm3, %v189_v23 }
  0x8e   : > { %v212_v25 = vld [vmem:[#allocation2 + $0x1] sm:$0xff] }
  0x8f   : > { %v195_v26 = vld [vmem:[#allocation2] sm:$0xff]  ;;  %v213_v27 = vpack.c.bf16 %v212_v25, %v212_v25 }
  0x90   : > { %v196_v28 = vpack.c.bf16 %v195_v26, %v195_v26  ;;  %v413_v37 = vld [vmem:[#allocation2 + $0x2] sm:$0xff] }
  0x91   : > { %738 = vmatmul.mubr.msk.bf16.vlgmr.msra.gmra.mxu0 %vm193_vm3, %v213_v27  ;;  %v414_v38 = vpack.c.bf16 %v413_v37, %v413_v37 }
  0x92   : > { %758 = vmatmul.mubr.msk.bf16.vlgmr.msra.gmra.mxu1 %vm193_vm3, %v196_v28  ;;  %762 = vmatpush3.bf16.msra.mxu0 %v480_v29 }
  0x93   : > { %777 = vmatprep.mubr.msk.bf16.mxu0 %vm826_vm2, %v824_v0  ;;  %763 = vmatprep.subr.bf16.mxu0 %v824_v0 }
  0x96   : > { %764 = vmatpush3.bf16.msra.mxu0 %v809_v30 }
  0x97   : > { %765 = vmatprep.subr.bf16.mxu0 %v824_v0 }
  0x9a   : > { %766 = vmatpush3.bf16.msra.mxu0 %v810_v31 }
  0x9b   : > { %767 = vmatprep.subr.bf16.mxu0 %v824_v0 }
  0x9e   : > { %768 = vmatpush3.bf16.msra.mxu0 %v811_v32 }
  0x9f   : > { %769 = vmatprep.subr.bf16.mxu0 %v824_v0 }
  0xa2   : > { %770 = vmatpush3.bf16.msra.mxu0 %v812_v33 }
  0xa3   : > { %771 = vmatprep.subr.bf16.mxu0 %v824_v0 }
  0xa6   : > { %772 = vmatpush3.bf16.msra.mxu0 %v813_v34 }
  0xa7   : > { %773 = vmatprep.subr.bf16.mxu0 %v824_v0 }
  0xaa   : > { %774 = vmatpush3.bf16.msra.mxu0 %v814_v35 }
  0xab   : > { %775 = vmatprep.subr.bf16.mxu0 %v824_v0 }
  0xae   : > { %776 = vmatpush3.bf16.msra.mxu0 %v815_v36 }
  0xb1   : > { %778 = vmatmul.mubr.msk.bf16.vlgmr.msra.gmra.mxu0 %vm193_vm3, %v414_v38 }
 0x151   : > { %v316_v39 = vpop.f32.mrf.mxu0 }
 0x152   : > { %v407_v40 = vpop.f32.mrf.mxu1 }
 0x153   : > { %v739_v41 = vpop.f32.mrf.mxu0  ;;  %v408_v47 = vadd.f32 %v407_v40, %v316_v39 }
 0x154   : > { %v759_v42 = vpop.f32.mrf.mxu1 }
 0x155   : > { %v319_v43 = vpop.f32.mrf.mxu0 }
 0x156   : > { %v410_v44 = vpop.f32.mrf.mxu1 }
 0x157   : > { %v740_v45 = vpop.f32.mrf.mxu0 }
 0x158   : > { %v760_v46 = vpop.f32.mrf.mxu1 }
 0x171   : > { %v516_v48 = vpop.f32.mrf.mxu0 }
 0x172   : > { %v522_v49 = vadd.f32 %v516_v48, %v408_v47 }
 0x173   : > { %v779_v50 = vpop.f32.mrf.mxu0 }
 0x174   : > { %v523_v51 = vrot.slane %v522_v49, 4  ;;  %v530_v52 = vmul.f32 %v522_v49, %v522_v49  ;;  %v538_v53 = vpack.c.bf16 %v522_v49, %v522_v49 }
 0x175   : > { %v519_v54 = vpop.f32.mrf.mxu0 }
 0x176   : > { %v524_v55 = vadd.f32 %v523_v51, %v522_v49  ;;  %v531_v56 = vrot.slane %v530_v52, 4  ;;  %539 = vst [vmem:[%s175_s20] sm:$0xf] %v538_v53 }
 0x177   : > { %v780_v57 = vpop.f32.mrf.mxu0 }
 0x178   : > { %v525_v58 = vrot.slane %v524_v55, 2  ;;  %v532_v59 = vadd.f32 %v531_v56, %v530_v52 }
 0x17a   : > { %v526_v60 = vadd.f32 %v525_v58, %v524_v55  ;;  %v533_v61 = vrot.slane %v532_v59, 2 }
 0x17c   : > { %v527_v62 = vrot.slane %v526_v60, 1  ;;  %v534_v63 = vadd.f32 %v533_v61, %v532_v59 }
 0x17e   : > { %v528_v0 = vadd.f32 %v527_v62, %v526_v60  ;;  %v535_v1 = vrot.slane %v534_v63, 1 }
 0x180   : > { %529 = vst [vmem:[%s179_s24] sm:$0x1] %v528_v0  ;;  %v536_v2 = vadd.f32 %v535_v1, %v534_v63 }
 0x182   : > { %537 = vst [vmem:[%s179_s24 + $0x1] sm:$0x1] %v536_v2 }
 0x183 PF: > { %s14_s12 = sadd.s32 1, %s822_s12  }
 0x184   : > { %p11_p4 = scmp.ge.s32.totalorder %s14_s12, 4  }
 0x186   :  { %13 = sbr.rel (!%p11_p4) target bundleno = 1 (0x1), region = 73 }

// kernel: down_pallas.3
= control target key start
LH: loop header
LB: loop body
LE: loop exit
PB: predicated region body
PF: predicated region fallthrough
CT: control target
= control target key end

     0   :  { %s904_s18 = smov 0   ;;  %s1039_s0 = inlined_call_operand.vmem [shape: bf16[2,8,128], index: 0, kind: input, shape index: {}]   ;;  %s1040_s1 = inlined_call_operand.vmem [shape: f32[1,128], index: 1, kind: input, shape index: {}]   ;;  %s1041_s2 = inlined_call_operand.vmem [shape: f32[1,128], index: 2, kind: input, shape index: {}]   ;;  %s1042_s3 = inlined_call_operand.vmem [shape: bf16[3,128,128], index: 3, kind: input, shape index: {}]   ;;  %s1043_s4 = inlined_call_operand.vmem [shape: f32[2,8,128], index: 4, kind: output, shape index: {0}]   ;;  %s1044_s5 = inlined_call_operand.vmem [shape: f32[2,2,128], index: 5, kind: output, shape index: {1}]  }
   0x1 LB: > { %s675_s19 = sadd.s32 4294967295, %s870_s18   ;;  %p679_p0 = scmp.ge.s32.totalorder %s870_s18, 1  ;;  %s870_s18 = sphi %s904_s18, %s16_s18  }
   0x2   : > { %p189_p1 = scmp.lt.s32.totalorder %s870_s18, 3 }
   0x4   : > { %p190_p2 = pnand %p679_p0, %p189_p1 }
   0x5   : > { %p219_p3 = scmp.lt.s32.totalorder (!%p190_p2), %s675_s19, 1 }
   0x6   : > { %193 = sbr.rel (%p190_p2) target bundleno = 286 (0x11e), region = 36 }
   0xb   : > { %v840_v0 = vld [vmem:[%s1042_s3 + $0x78] sm:$0xff]   ;;  %v872_v1 = vmov 0.0   ;;  %v842_v3 = vld [vmem:[%s1042_s3 + $0x70] sm:$0xff]   ;;  %vm873_vm0 = vmmov 0   ;;  %v844_v5 = vld [vmem:[%s1042_s3 + $0x68] sm:$0xff]   ;;  %s1046_s19 = smov (!%p219_p3, %s675_s19), 1 }
   0xc   : > { %770 = vmatprep.subr.bf16.mxu0 %v872_v1  ;;  %251 = vst [vmem:[#allocation2] sm:$0x1] %v872_v1  ;;  %252 = vst [vmem:[#allocation2 + $0x9] sm:$0x1] %v872_v1  ;;  %790 = vmatprep.subr.bf16.mxu1 %v872_v1  ;;  %v841_v2 = vld [vmem:[%s1042_s3 + $0x38] sm:$0xff]   ;;  %v843_v4 = vld [vmem:[%s1042_s3 + $0x30] sm:$0xff]  }
   0xd   : > { %771 = vmatpush3.bf16.msra.mxu0 %v840_v0  ;;  %786 = vmatprep.mubr.msk.bf16.mxu0 %vm873_vm0, %v872_v1  ;;  %v845_v6 = vld [vmem:[%s1042_s3 + $0x28] sm:$0xff]   ;;  %v846_v7 = vld [vmem:[%s1042_s3 + $0x60] sm:$0xff]   ;;  %s680_s9 = sshll.u32 %s1046_s19, 2  ;;  %v848_v9 = vld [vmem:[%s1042_s3 + $0x58] sm:$0xff]   ;;  %s681_s30 = sshll.u32 %s1046_s19, 3 }
   0xe   : > { %791 = vmatpush3.bf16.msra.mxu1 %v841_v2  ;;  %772 = vmatprep.subr.bf16.mxu0 %v872_v1  ;;  %v847_v8 = vld [vmem:[%s1042_s3 + $0x20] sm:$0xff]   ;;  %s222_s14 = scalar_lea.vmem %s1039_s0, %s680_s9  ;;  %v849_v10 = vld [vmem:[%s1042_s3 + $0x18] sm:$0xff]   ;;  %v850_v13 = vld [vmem:[%s1042_s3 + $0x50] sm:$0xff]   ;;  %s226_s8 = scalar_lea.vmem %s1043_s4, %s681_s30 }
   0xf   : > { %792 = vmatprep.subr.bf16.mxu1 %v872_v1  ;;  %806 = vmatprep.mubr.msk.bf16.mxu1 %vm873_vm0, %v872_v1  ;;  %v232_v11 = vld [vmem:[%s222_s14] sm:$0xf]  ;;  %v851_v16 = vld [vmem:[%s1042_s3 + $0x10] sm:$0xff]   ;;  %v852_v19 = vld [vmem:[%s1042_s3 + $0x48] sm:$0xff]   ;;  %s682_s9 = sshll.u32 %s1046_s19, 1 }
  0x10   : > { %v683_v12 = vld [vmem:[%s1040_s1] ss:$0 sm:$0xff]  ;;  %v233_v14 = vunpack.c.l.bf16 %v232_v11  ;;  %v853_v20 = vld [vmem:[%s1042_s3 + $0x8] sm:$0xff]   ;;  %v856_v25 = vld [vmem:[%s1042_s3 + $0xb8] sm:$0xff]   ;;  %s230_s12 = scalar_lea.vmem %s1044_s5, %s682_s9 }
  0x11   : > { %773 = vmatpush3.bf16.msra.mxu0 %v842_v3  ;;  %v684_v15 = vld [vmem:[%s1041_s2] ss:$0 sm:$0xff]  ;;  %v857_v28 = vld [vmem:[%s1042_s3 + $0xb0] sm:$0xff]   ;;  %v858_v29 = vld [vmem:[%s1042_s3 + $0xa8] sm:$0xff]  }
  0x12   : > { %793 = vmatpush3.bf16.msra.mxu1 %v843_v4  ;;  %774 = vmatprep.subr.bf16.mxu0 %v872_v1  ;;  %v241_v17 = vmul.f32 %v683_v12, %v233_v14  ;;  %v854_v22 = vld [vmem:[%s1042_s3 + $0x40] sm:$0xff]   ;;  %v860_v31 = vld [vmem:[%s1042_s3 + $0x98] sm:$0xff]   ;;  %v861_v32 = vld [vmem:[%s1042_s3 + $0x90] sm:$0xff]  }
  0x13   : > { %794 = vmatprep.subr.bf16.mxu1 %v872_v1  ;;  %v855_v23 = vld [vmem:[%s1042_s3] sm:$0xff]   ;;  %v862_v33 = vld [vmem:[%s1042_s3 + $0x88] sm:$0xff]  }
  0x14   : > { %v249_v18 = vadd.f32 %v684_v15, %v241_v17  ;;  %v859_v30 = vld [vmem:[%s1042_s3 + $0xa0] sm:$0xff]  }
  0x15   : > { %775 = vmatpush3.bf16.msra.mxu0 %v844_v5  ;;  %v863_v34 = vld [vmem:[%s1042_s3 + $0x80] sm:$0xff]  }
  0x16   : > { %795 = vmatpush3.bf16.msra.mxu1 %v845_v6  ;;  %776 = vmatprep.subr.bf16.mxu0 %v872_v1  ;;  %v250_v21 = vmax.f32 %v249_v18, 0.0 }
  0x17   : > { %796 = vmatprep.subr.bf16.mxu1 %v872_v1 }
  0x18   : > { %253 = vst [vmem:[#allocation2 + $0x1] sm:$0xff] %v250_v21  ;;  %v273_v24 = vpack.c.bf16 %v250_v21, %v250_v21 }
  0x19   : > { %777 = vmatpush3.bf16.msra.mxu0 %v846_v7 }
  0x1a   : > { %797 = vmatpush3.bf16.msra.mxu1 %v847_v8  ;;  %778 = vmatprep.subr.bf16.mxu0 %v872_v1 }
  0x1b   : > { %798 = vmatprep.subr.bf16.mxu1 %v872_v1 }
  0x1d   : > { %779 = vmatpush3.bf16.msra.mxu0 %v848_v9 }
  0x1e   : > { %799 = vmatpush3.bf16.msra.mxu1 %v849_v10  ;;  %780 = vmatprep.subr.bf16.mxu0 %v872_v1 }
  0x1f   : > { %800 = vmatprep.subr.bf16.mxu1 %v872_v1  ;;  %v254_v26 = vld [vmem:[#allocation2] sm:$0xff] }
  0x20   : > { %v255_v27 = vpack.c.bf16 %v254_v26, %v254_v26  ;;  %v467_v35 = vld [vmem:[#allocation2 + $0x2] sm:$0xff] }
  0x21   : > { %781 = vmatpush3.bf16.msra.mxu0 %v850_v13  ;;  %v468_v36 = vpack.c.bf16 %v467_v35, %v467_v35 }
  0x22   : > { %801 = vmatpush3.bf16.msra.mxu1 %v851_v16  ;;  %782 = vmatprep.subr.bf16.mxu0 %v872_v1 }
  0x23   : > { %802 = vmatprep.subr.bf16.mxu1 %v872_v1 }
  0x25   : > { %783 = vmatpush3.bf16.msra.mxu0 %v852_v19 }
  0x26   : > { %803 = vmatpush3.bf16.msra.mxu1 %v853_v20  ;;  %784 = vmatprep.subr.bf16.mxu0 %v872_v1 }
  0x27   : > { %804 = vmatprep.subr.bf16.mxu1 %v872_v1 }
  0x29   : > { %785 = vmatpush3.bf16.msra.mxu0 %v854_v22 }
  0x2a   : > { %805 = vmatpush3.bf16.msra.mxu1 %v855_v23  ;;  %810 = vmatprep.subr.bf16.mxu0 %v872_v1 }
  0x2c   : > { %787 = vmatmul.mubr.bf16.vlgmr.msra.gmra.mxu0 %v273_v24 }
  0x2d   : > { %811 = vmatpush3.bf16.msra.mxu0 %v856_v25  ;;  %826 = vmatprep.mubr.msk.bf16.mxu0 %vm873_vm0, %v872_v1 }
  0x2e   : > { %807 = vmatmul.mubr.bf16.vlgmr.msra.gmra.mxu1 %v255_v27  ;;  %812 = vmatprep.subr.bf16.mxu0 %v872_v1 }
  0x31   : > { %813 = vmatpush3.bf16.msra.mxu0 %v857_v28 }
  0x32   : > { %814 = vmatprep.subr.bf16.mxu0 %v872_v1 }
  0x35   : > { %815 = vmatpush3.bf16.msra.mxu0 %v858_v29 }
  0x36   : > { %816 = vmatprep.subr.bf16.mxu0 %v872_v1 }
  0x39   : > { %817 = vmatpush3.bf16.msra.mxu0 %v859_v30 }
  0x3a   : > { %818 = vmatprep.subr.bf16.mxu0 %v872_v1 }
  0x3d   : > { %819 = vmatpush3.bf16.msra.mxu0 %v860_v31 }
  0x3e   : > { %820 = vmatprep.subr.bf16.mxu0 %v872_v1 }
  0x41   : > { %821 = vmatpush3.bf16.msra.mxu0 %v861_v32 }
  0x42   : > { %822 = vmatprep.subr.bf16.mxu0 %v872_v1 }
  0x45   : > { %823 = vmatpush3.bf16.msra.mxu0 %v862_v33 }
  0x46   : > { %824 = vmatprep.subr.bf16.mxu0 %v872_v1 }
  0x49   : > { %825 = vmatpush3.bf16.msra.mxu0 %v863_v34 }
  0x4c   : > { %827 = vmatmul.mubr.bf16.vlgmr.msra.gmra.mxu0 %v468_v36 }
  0xec   : > { %v373_v37 = vpop.f32.mrf.mxu0 }
  0xee   : > { %v461_v38 = vpop.f32.mrf.mxu1  ;;  %v788_v39 = vpop.f32.mrf.mxu0 }
  0xef   : > { %v462_v45 = vadd.f32 %v461_v38, %v373_v37 }
  0xf0   : > { %v376_v40 = vpop.f32.mrf.mxu0  ;;  %v808_v41 = vpop.f32.mrf.mxu1 }
  0xf2   : > { %v789_v42 = vpop.f32.mrf.mxu0  ;;  %v464_v43 = vpop.f32.mrf.mxu1 }
  0xf4   : > { %v809_v44 = vpop.f32.mrf.mxu1 }
 0x10c   : > { %v568_v46 = vpop.f32.mrf.mxu0 }
 0x10d   : > { %v574_v47 = vadd.f32 %v568_v46, %v462_v45 }
 0x10e   : > { %v828_v48 = vpop.f32.mrf.mxu0 }
 0x10f   : > { %v575_v49 = vrot.slane %v574_v47, 4  ;;  %v582_v50 = vmul.f32 %v574_v47, %v574_v47  ;;  %590 = vst [vmem:[%s226_s8] sm:$0xff] %v574_v47 }
 0x110   : > { %v571_v51 = vpop.f32.mrf.mxu0 }
 0x111   : > { %v576_v52 = vadd.f32 %v575_v49, %v574_v47  ;;  %v583_v53 = vrot.slane %v582_v50, 4 }
 0x112   : > { %v829_v54 = vpop.f32.mrf.mxu0 }
 0x113   : > { %v577_v55 = vrot.slane %v576_v52, 2  ;;  %v584_v56 = vadd.f32 %v583_v53, %v582_v50 }
 0x115   : > { %v578_v57 = vadd.f32 %v577_v55, %v576_v52  ;;  %v585_v58 = vrot.slane %v584_v56, 2 }
 0x117   : > { %v579_v59 = vrot.slane %v578_v57, 1  ;;  %v586_v60 = vadd.f32 %v585_v58, %v584_v56 }
 0x119   : > { %v580_v61 = vadd.f32 %v579_v59, %v578_v57  ;;  %v587_v62 = vrot.slane %v586_v60, 1 }
 0x11b   : > { %581 = vst [vmem:[%s230_s12] sm:$0x1] %v580_v61  ;;  %v588_v63 = vadd.f32 %v587_v62, %v586_v60 }
 0x11d   : > { %589 = vst [vmem:[%s230_s12 + $0x1] sm:$0x1] %v588_v63 }
 0x11e PF: > { %s16_s18 = sadd.s32 1, %s870_s18  }
 0x11f   : > { %p13_p4 = scmp.ge.s32.totalorder %s16_s18, 4  }
 0x121   :  { %15 = sbr.rel (!%p13_p4) target bundleno = 1 (0x1), region = 80 }

</bundles_post_ra>
